<compile_context>
chip_gen: v6e
topology: v6e:2x2x1
jax: 0.10.0
libtpu: 0.0.40
codegen_flags: <defaults>
</compile_context>

<pallas_src>
from functools import partial

import numpy as np
import jax
import jax.numpy as jnp
from jax.experimental import pallas as pl
from jax.experimental.pallas import tpu as pltpu


def _position_encoding(time_frames: int, feature_count: int, n: int = 10000) -> np.ndarray:
    """Vectorized replica of Attention.__get_position_encoding__ (single instance)."""
    half = feature_count // 2
    k = np.arange(time_frames, dtype=np.float64)[:, None]
    i = np.arange(half, dtype=np.float64)[None, :]
    denom = np.power(float(n), 2.0 * i / feature_count)
    x = np.zeros((time_frames, feature_count), dtype=np.float64)
    x[:, 0:2 * half:2] = np.sin(k / denom)
    x[:, 1:2 * half:2] = np.cos(k / denom)
    return x.astype(np.float32)


def _exp_dtype_for_device():
    """bf16 exp only where the EUP supports it (v6e / v7x); f32 on v5e and older."""
    try:
        kind = jax.devices()[0].device_kind.lower()
    except Exception:
        return jnp.float32
    old = any(t in kind for t in ("v2", "v3", "v4", "v5"))
    return jnp.float32 if old else jnp.bfloat16


def _vmem_capacity_bytes():
    try:
        return int(pltpu.get_tpu_info().vmem_capacity_bytes)
    except Exception:
        return 64 * 1024 * 1024          # conservative fallback: v7x per-TensorCore VMEM


def _attention_kernel(step_count, step_size, exp_dtype,
                      xq_ref, pq_ref, kt_ref, vcat_ref, mask_ref, o_ref):
    bb, tq, fq = xq_ref.shape
    rows = bb * tq
    heff, tk = kt_ref.shape
    cv_p = vcat_ref.shape[1] // step_count

    # Q = relu((x_query + PE)[..., :heff]); the identity query_key_layer projection is elided.
    xq = (xq_ref[...] + pq_ref[...][None, :, :]).reshape(rows, fq)
    q = jnp.maximum(xq[:, :heff], 0.0).astype(jnp.bfloat16)

    # Attention logits against the hoisted, pre-transposed bf16 key projection K^T [heff, Tk].
    a = jnp.dot(q, kt_ref[...], preferred_element_type=jnp.float32)          # [rows, Tk] f32

    # torch.std(dim=-1) is unbiased (correction = 1).  Max-shifted single-pass moments keep
    # the one-pass variance numerically safe; the shifted logits double as the softmax
    # max-subtraction (inv_std > 0, so max(a/std) == max(a)/std).
    amax = jnp.max(a, axis=-1, keepdims=True)
    a = a - amax                                                              # a <= 0
    s1 = jnp.sum(a, axis=-1, keepdims=True)
    s2 = jnp.sum(a * a, axis=-1, keepdims=True)
    var = (s2 - s1 * s1 * (1.0 / tk)) * (1.0 / max(tk - 1, 1))   # Tk==1: torch would give NaN
    var = jnp.maximum(var, 0.0)
    denom = jnp.sqrt(var) + 1e-5
    inv_std = pl.reciprocal(denom, approx=True)                   # EUP
    inv_std = inv_std * (2.0 - denom * inv_std)                   # Newton step (~f32 exact)
    a = a * inv_std

    # softmax over the key/value-time axis (exp in bf16 where the EUP supports it).
    p = jnp.exp(a.astype(exp_dtype)).astype(jnp.float32)
    l = jnp.sum(p, axis=-1, keepdims=True)
    inv_l = pl.reciprocal(l, approx=True)
    inv_l = inv_l * (2.0 - l * inv_l)
    p = (p * inv_l).astype(jnp.bfloat16)

    # Shifted-attention stack + value matmul + shift_layer as ONE lane-dense bf16 MXU matmul:
    # vcat[:, s*cv_p:(s+1)*cv_p] = w_shift * ColShiftUp_{d_s}(V) (zero-padded to cv_p lanes),
    # so A_s @ V == RowShiftDown_{d_s}(A @ vcat_slice_s) and the weighted sum is a plain add.
    # TODO(synk): for Cv << 128 a diagonal shift-and-sum of A (S-1 rolls/masks on [rows,Tk])
    # followed by a single A_sum @ V matmul would cut the MXU N-work by step_count.
    t = jnp.dot(p, vcat_ref[...], preferred_element_type=jnp.float32)        # [rows, S*cv_p]

    acc = t[:, (step_count - 1) * cv_p:]                                      # shift with d == 0
    if step_count > 1:
        # The row shift-down must stay inside each folded batch instance: a global sublane
        # roll + the precomputed within-instance [rows,1] mask (lane-broadcast multiply) is
        # exactly equivalent (rows with within-instance index >= d never cross an instance
        # boundary when rolled by d).
        for sp in range(step_count - 1):
            d = (step_count - 1 - sp) * step_size
            if d >= tq:                       # shifted slice falls outside every instance
                continue
            tp = pltpu.roll(t[:, sp * cv_p:(sp + 1) * cv_p], shift=d, axis=0)
            acc = acc + tp * mask_ref[sp]

    o_ref[...] = acc.reshape(bb, tq, cv_p)


class AttentionPallas:
    """JAX/Pallas equivalent of the PyTorch `Attention` module (stationary mode)."""

    def __init__(self, query_feature_count, hidden_feature_count, x_key, x_value,
                 step_count: int = 1, step_size: int = 1):
        x_key = np.asarray(x_key, np.float32)
        x_value = np.asarray(x_value, np.float32)
        tk, ck = x_key.shape
        assert ck == query_feature_count
        assert x_value.shape[0] == tk
        assert step_count >= 1 and step_size >= 1

        self.query_feature_count = query_feature_count
        self.hidden_feature_count = hidden_feature_count
        self.step_count = step_count
        self.step_size = step_size

        # TODO(synk): mut.reshape_by_label (per-word grouping of the key positional encoding
        # via labels/pause_string) is external/unavailable; the PE is applied to the whole key
        # time course as a single instance instead.
        p_key = _position_encoding(tk, ck)
        x_key_pe = x_key + p_key                                   # [Tk, Fq], numpy (reference)
        self.x_key_pe = x_key_pe
        self.x_value = x_value

        # query_key_layer.weight is hard-coded to eye(hidden, query_feature_count) (no bias);
        # only the first heff = min(H, Fq) features survive relu + the Q@K^T contraction.
        self.wqk = np.eye(hidden_feature_count, query_feature_count, dtype=np.float32)
        heff = min(hidden_feature_count, query_feature_count)
        self.heff = heff

        # Hoisted (batch-invariant) key projection, pre-transposed, bf16 MXU operand.
        k_proj = np.maximum(x_key_pe[:, :heff], 0.0)                          # [Tk, heff]
        self.k_t = jnp.asarray(np.ascontiguousarray(k_proj.T), jnp.bfloat16)  # [heff, Tk]

        # Lane-concatenated, shift-weighted, column-pre-shifted value stack (bf16 MXU operand).
        # shift_layer.weight = ones(1, step_count)/step_count is folded in here.
        cv = x_value.shape[1]
        self.cv = cv
        self.cv_p = ((cv + 127) // 128) * 128                      # lane-dense matmul/store width
        w_shift = 1.0 / step_count
        vcat = np.zeros((tk, step_count * self.cv_p), np.float32)
        for p in range(step_count):
            d = (step_count - 1 - p) * step_size
            if d < tk:
                vcat[:tk - d, p * self.cv_p: p * self.cv_p + cv] = w_shift * x_value[d:, :]
        self.vcat = jnp.asarray(vcat, jnp.bfloat16)

        self._exp_dtype = _exp_dtype_for_device()
        self._vmem_cap = _vmem_capacity_bytes()
        # Scoped-VMEM limit for the kernel: leave headroom for compiler-internal scratch.
        self._vmem_limit = max(16 * 1024 * 1024,
                               min(int(self._vmem_cap * 0.75), self._vmem_cap - (8 << 20)))

        self._pos_enc_cache = {}
        self._mask_cache = {}
        self._call_cache = {}
        self._single_buffer = True   # pl.Buffered(1) on grid-invariant operands (see __call__)

    # ------------------------------------------------------------------ helpers

    def _pos_enc(self, tq, fq):
        key = (tq, fq)
        if key not in self._pos_enc_cache:
            self._pos_enc_cache[key] = jnp.asarray(_position_encoding(tq, fq))
        return self._pos_enc_cache[key]

    def _row_mask(self, bb, tq_pad):
        """[max(S-1,1), bb*tq_pad, 1] f32 within-instance validity masks for the row shifts."""
        key = (bb, tq_pad)
        m = self._mask_cache.get(key)
        if m is None:
            s, ss = self.step_count, self.step_size
            rows = bb * tq_pad
            mask = np.ones((max(s - 1, 1), rows, 1), np.float32)
            if s > 1:
                ri = np.arange(rows, dtype=np.int64) % tq_pad
                for p in range(s - 1):
                    d = (s - 1 - p) * ss
                    mask[p, :, 0] = (ri >= d).astype(np.float32)
            m = jnp.asarray(mask)
            self._mask_cache[key] = m
        return m

    def _pick_batch_block(self, b, tq_pad, fq):
        """Largest divisor of b whose folded VMEM footprint fits this generation's budget."""
        tk = self.k_t.shape[1]
        s, cv_p, heff = self.step_count, self.cv_p, self.heff
        # Single-buffered grid-invariant operands (PE f32, K^T bf16, vcat bf16).
        const_bytes = tq_pad * fq * 4 + heff * tk * 2 + tk * s * cv_p * 2
        budget = int(self._vmem_limit * 0.85) - const_bytes
        # 128 MiB chips (v5e/v6e) can feed a larger folded M than 64 MiB v7x.
        rows_cap = 1024 if self._vmem_cap >= 96 * (1 << 20) else 512
        # Keep >= 2 grid steps whenever the batch allows it so dimension_semantics=
        # ("parallel",) can shard the grid across v7x's two TensorCores.
        bb_max = b if b < 2 else b // 2
        best = 1
        for bb in range(1, bb_max + 1):
            if b % bb:
                continue
            rows = bb * tq_pad
            io_bytes = 2 * rows * fq * 4 + 2 * rows * cv_p * 4     # double-buffered in/out blocks
            inter_bytes = (3 * rows * tk * 4                        # logits / exp / prob copies
                           + (s + 1) * rows * cv_p * 4              # shift matmul result + acc
                           + 2 * rows * max(fq, heff) * 4           # folded query / Q
                           + max(s - 1, 1) * rows * 4)              # row masks
            if rows <= rows_cap and io_bytes + inter_bytes <= budget:
                best = bb
        return best

    def _build(self, b, bb, tq_pad, fq, single_buffer):
        s, cv_p, heff = self.step_count, self.cv_p, self.heff
        tk = self.k_t.shape[1]
        nmask = max(s - 1, 1)
        const_kw = dict(pipeline_mode=pl.Buffered(1)) if single_buffer else {}
        in_specs = [
            pl.BlockSpec((bb, tq_pad, fq), lambda i: (i, 0, 0)),                    # x_query
            pl.BlockSpec((tq_pad, fq), lambda i: (0, 0), **const_kw),               # query PE
            pl.BlockSpec((heff, tk), lambda i: (0, 0), **const_kw),                 # K^T (bf16)
            pl.BlockSpec((tk, s * cv_p), lambda i: (0, 0), **const_kw),             # value concat
            pl.BlockSpec((nmask, bb * tq_pad, 1), lambda i: (0, 0, 0), **const_kw),  # row masks
        ]
        # TODO(synk): for very large Tq, add a flash-style query-time grid axis (with a
        # d_max=(S-1)*step_size row halo / carried tail) to bound the [rows,Tk] logits
        # residency and give v7x a second parallel axis when the batch is 1.
        return pl.pallas_call(
            partial(_attention_kernel, s, self.step_size, self._exp_dtype),
            out_shape=jax.ShapeDtypeStruct((b, tq_pad, cv_p), jnp.float32),
            grid=(b // bb,),
            in_specs=in_specs,
            out_specs=pl.BlockSpec((bb, tq_pad, cv_p), lambda i: (i, 0, 0)),
            compiler_params=pltpu.CompilerParams(
                dimension_semantics=("parallel",),
                vmem_limit_bytes=self._vmem_limit),
        )

    # ------------------------------------------------------------------ forward

    def __call__(self, x_query):
        x_query = jnp.asarray(x_query, jnp.float32)
        if x_query.ndim == 2:
            x_query = x_query[None]
        b, tq, fq = x_query.shape
        assert fq == self.query_feature_count

        # Sublane-align the query time axis so the (bb,Tq,X)->(bb*Tq,X) folds are free.
        tq_pad = ((tq + 7) // 8) * 8
        if tq_pad != tq:
            x_query = jnp.pad(x_query, ((0, 0), (0, tq_pad - tq), (0, 0)))

        p_query = self._pos_enc(tq_pad, fq)
        bb = self._pick_batch_block(b, tq_pad, fq)
        mask = self._row_mask(bb, tq_pad)

        key = (b, bb, tq_pad, fq)
        fn = self._call_cache.get(key)
        if fn is None:
            if self._single_buffer:
                try:
                    fn = self._build(b, bb, tq_pad, fq, single_buffer=True)
                    out = jax.block_until_ready(
                        fn(x_query, p_query, self.k_t, self.vcat, mask))
                    self._call_cache[key] = fn
                    return out[:, :tq, :self.cv]
                except Exception:
                    # pl.Buffered(1) rejected by this jax/Mosaic version: fall back to default
                    # double buffering for the grid-invariant operands.
                    self._single_buffer = False
            fn = self._build(b, bb, tq_pad, fq, single_buffer=False)
            self._call_cache[key] = fn
        out = fn(x_query, p_query, self.k_t, self.vcat, mask)
        return out[:, :tq, :self.cv]


def _reference_forward(x_query, x_key_pe, x_value, wqk, step_count, step_size):
    """Pure-numpy mirror of the PyTorch forward (for correctness checking)."""
    x_query = np.asarray(x_query, np.float32)
    x_key_pe = np.asarray(x_key_pe, np.float32)
    x_value = np.asarray(x_value, np.float32)
    b, tq, fq = x_query.shape
    tk = x_key_pe.shape[0]
    p_q = _position_encoding(tq, fq)
    q = np.maximum((x_query + p_q[None]) @ wqk.T, 0.0)               # [B, Tq, H]
    k = np.maximum(x_key_pe @ wqk.T, 0.0)                            # [Tk, H]
    a = np.einsum("bqh,kh->bqk", q, k)
    std = a.std(axis=-1, ddof=1, keepdims=True)
    a = a / (std + 1e-5)
    a = np.exp(a - a.max(-1, keepdims=True))
    a = a / a.sum(-1, keepdims=True)
    kpad = (step_count - 1) * step_size
    a_pad = np.zeros((b, tq + kpad, tk + kpad), np.float32)
    a_pad[:, kpad:, kpad:] = a
    y = np.zeros((b, tq, x_value.shape[1]), np.float32)
    for p in range(step_count):
        off = p * step_size
        a_p = a_pad[:, off:off + tq, off:off + tk]
        y += (1.0 / step_count) * np.einsum("bqk,kc->bqc", a_p, x_value)
    return y


if __name__ == "__main__":
    key = jax.random.PRNGKey(0)
    B, Tq, Tk = 2, 16, 16
    Fq, H, Cv = 8, 8, 8
    step_count, step_size = 2, 1

    k1, k2, k3 = jax.random.split(key, 3)
    x_key = jax.random.normal(k1, (Tk, Fq), jnp.float32)
    x_value = jax.random.normal(k2, (Tk, Cv), jnp.float32)
    x_query = jax.random.normal(k3, (B, Tq, Fq), jnp.float32)

    model = AttentionPallas(query_feature_count=Fq, hidden_feature_count=H,
                            x_key=np.asarray(x_key), x_value=np.asarray(x_value),
                            step_count=step_count, step_size=step_size)

    y = jax.block_until_ready(model(x_query))

    y_ref = _reference_forward(np.asarray(x_query), model.x_key_pe, model.x_value,
                               model.wqk, step_count, step_size)
    assert y.shape == y_ref.shape, (y.shape, y_ref.shape)
    # bf16 MXU operands (and bf16 exp on v6e/v7x) trade ~1e-2-level absolute accuracy vs the
    # f32 reference; structural errors (wrong shift/mask) would show up at ~3e-1.
    assert np.allclose(np.asarray(y), y_ref, rtol=5e-2, atol=5e-2), \
        f"max abs err {np.max(np.abs(np.asarray(y) - y_ref))}"

    print("KERNEL_OK")
</pallas_src>

<mosaic_0001>
module attributes {stable_mosaic.version = 11 : i64} {
  func.func @_attention_kernel(%arg0: i32, %arg1: memref<1x16x8xf32, #tpu.memory_space<vmem>>, %arg2: memref<16x8xf32, #tpu.memory_space<vmem>>, %arg3: memref<8x16xbf16, #tpu.memory_space<vmem>>, %arg4: memref<16x256xbf16, #tpu.memory_space<vmem>>, %arg5: memref<1x16x1xf32, #tpu.memory_space<vmem>>, %arg6: memref<1x16x128xf32, #tpu.memory_space<vmem>>) attributes {dimension_semantics = [#tpu.dimension_semantics<parallel>], iteration_bounds = array<i64: 2>, scalar_prefetch = 0 : i64, scratch_operands = 0 : i64, tpu.core_type = #tpu.core_type<tc>, window_params = [{transform_indices = @transform_0, window_bounds = array<i64: 1, 16, 8>}, {pipeline_mode = #tpu.pipeline_mode<synchronous>, transform_indices = @transform_1, window_bounds = array<i64: 16, 8>}, {pipeline_mode = #tpu.pipeline_mode<synchronous>, transform_indices = @transform_2, window_bounds = array<i64: 8, 16>}, {pipeline_mode = #tpu.pipeline_mode<synchronous>, transform_indices = @transform_3, window_bounds = array<i64: 16, 256>}, {pipeline_mode = #tpu.pipeline_mode<synchronous>, transform_indices = @transform_4, window_bounds = array<i64: 1, 16, 1>}, {transform_indices = @transform_5, window_bounds = array<i64: 1, 16, 128>}]} {
    %c0 = arith.constant 0 : index
    %c0_0 = arith.constant 0 : index
    %c0_1 = arith.constant 0 : index
    %0 = vector.load %arg1[%c0, %c0_0, %c0_1] : memref<1x16x8xf32, #tpu.memory_space<vmem>>, vector<1x16x8xf32>
    %c0_2 = arith.constant 0 : index
    %c0_3 = arith.constant 0 : index
    %1 = vector.load %arg2[%c0_2, %c0_3] : memref<16x8xf32, #tpu.memory_space<vmem>>, vector<16x8xf32>
    %2 = vector.shape_cast %1 : vector<16x8xf32> to vector<1x16x8xf32>
    %3 = arith.addf %0, %2 : vector<1x16x8xf32>
    %4 = vector.shape_cast %3 : vector<1x16x8xf32> to vector<16x8xf32>
    %cst = arith.constant 0.000000e+00 : f32
    %5 = vector.broadcast %cst : f32 to vector<16x8xf32>
    %6 = arith.maximumf %4, %5 : vector<16x8xf32>
    %7 = arith.truncf %6 : vector<16x8xf32> to vector<16x8xbf16>
    %c0_4 = arith.constant 0 : index
    %c0_5 = arith.constant 0 : index
    %8 = vector.load %arg3[%c0_4, %c0_5] : memref<8x16xbf16, #tpu.memory_space<vmem>>, vector<8x16xbf16>
    %cst_6 = arith.constant dense<0.000000e+00> : vector<16x16xf32>
    %9 = tpu.matmul %7, %8, %cst_6 {dimension_numbers = #tpu.dot_dimension_numbers<[1], [0], [0], [1], [0, 0, 1, 1], [], []>} : vector<16x8xbf16>, vector<8x16xbf16>, vector<16x16xf32> -> vector<16x16xf32>
    %cst_7 = arith.constant dense<0xFF800000> : vector<16xf32>
    %10 = vector.multi_reduction <maximumf>, %9, %cst_7 [1] : vector<16x16xf32> to vector<16xf32>
    %11 = vector.shape_cast %10 : vector<16xf32> to vector<16x1xf32>
    %12 = vector.broadcast %11 : vector<16x1xf32> to vector<16x16xf32>
    %13 = arith.subf %9, %12 : vector<16x16xf32>
    %cst_8 = arith.constant dense<0.000000e+00> : vector<16xf32>
    %14 = vector.multi_reduction <add>, %13, %cst_8 [1] : vector<16x16xf32> to vector<16xf32>
    %15 = vector.shape_cast %14 : vector<16xf32> to vector<16x1xf32>
    %16 = arith.mulf %13, %13 : vector<16x16xf32>
    %cst_9 = arith.constant dense<0.000000e+00> : vector<16xf32>
    %17 = vector.multi_reduction <add>, %16, %cst_9 [1] : vector<16x16xf32> to vector<16xf32>
    %18 = vector.shape_cast %17 : vector<16xf32> to vector<16x1xf32>
    %19 = arith.mulf %15, %15 : vector<16x1xf32>
    %cst_10 = arith.constant 6.250000e-02 : f32
    %20 = vector.broadcast %cst_10 : f32 to vector<16x1xf32>
    %21 = arith.mulf %19, %20 : vector<16x1xf32>
    %22 = arith.subf %18, %21 : vector<16x1xf32>
    %cst_11 = arith.constant 0.0666666701 : f32
    %23 = vector.broadcast %cst_11 : f32 to vector<16x1xf32>
    %24 = arith.mulf %22, %23 : vector<16x1xf32>
    %cst_12 = arith.constant 0.000000e+00 : f32
    %25 = vector.broadcast %cst_12 : f32 to vector<16x1xf32>
    %26 = arith.maximumf %24, %25 : vector<16x1xf32>
    %27 = math.sqrt %26 : vector<16x1xf32>
    %cst_13 = arith.constant 9.99999974E-6 : f32
    %28 = vector.broadcast %cst_13 : f32 to vector<16x1xf32>
    %29 = arith.addf %27, %28 : vector<16x1xf32>
    %30 = tpu.reciprocal %29 {approx = true} : vector<16x1xf32> -> vector<16x1xf32>
    %31 = arith.mulf %29, %30 : vector<16x1xf32>
    %cst_14 = arith.constant 2.000000e+00 : f32
    %32 = vector.broadcast %cst_14 : f32 to vector<16x1xf32>
    %33 = arith.subf %32, %31 : vector<16x1xf32>
    %34 = arith.mulf %30, %33 : vector<16x1xf32>
    %35 = vector.broadcast %34 : vector<16x1xf32> to vector<16x16xf32>
    %36 = arith.mulf %13, %35 : vector<16x16xf32>
    %37 = arith.truncf %36 : vector<16x16xf32> to vector<16x16xbf16>
    %38 = math.exp %37 : vector<16x16xbf16>
    %39 = arith.extf %38 : vector<16x16xbf16> to vector<16x16xf32>
    %cst_15 = arith.constant dense<0.000000e+00> : vector<16xf32>
    %40 = vector.multi_reduction <add>, %39, %cst_15 [1] : vector<16x16xf32> to vector<16xf32>
    %41 = vector.shape_cast %40 : vector<16xf32> to vector<16x1xf32>
    %42 = tpu.reciprocal %41 {approx = true} : vector<16x1xf32> -> vector<16x1xf32>
    %43 = arith.mulf %41, %42 : vector<16x1xf32>
    %cst_16 = arith.constant 2.000000e+00 : f32
    %44 = vector.broadcast %cst_16 : f32 to vector<16x1xf32>
    %45 = arith.subf %44, %43 : vector<16x1xf32>
    %46 = arith.mulf %42, %45 : vector<16x1xf32>
    %47 = vector.broadcast %46 : vector<16x1xf32> to vector<16x16xf32>
    %48 = arith.mulf %39, %47 : vector<16x16xf32>
    %49 = arith.truncf %48 : vector<16x16xf32> to vector<16x16xbf16>
    %c0_17 = arith.constant 0 : index
    %c0_18 = arith.constant 0 : index
    %50 = vector.load %arg4[%c0_17, %c0_18] : memref<16x256xbf16, #tpu.memory_space<vmem>>, vector<16x256xbf16>
    %cst_19 = arith.constant dense<0.000000e+00> : vector<16x256xf32>
    %51 = tpu.matmul %49, %50, %cst_19 {dimension_numbers = #tpu.dot_dimension_numbers<[1], [0], [0], [1], [0, 0, 1, 1], [], []>} : vector<16x16xbf16>, vector<16x256xbf16>, vector<16x256xf32> -> vector<16x256xf32>
    %52 = vector.extract_strided_slice %51 {offsets = [0, 128], sizes = [16, 128], strides = [1, 1]} : vector<16x256xf32> to vector<16x128xf32>
    %53 = vector.extract_strided_slice %51 {offsets = [0, 0], sizes = [16, 128], strides = [1, 1]} : vector<16x256xf32> to vector<16x128xf32>
    %c1_i32 = arith.constant 1 : i32
    %54 = tpu.dynamic_rotate %53 by %c1_i32 dim 0 : vector<16x128xf32>, i32 -> vector<16x128xf32>
    %c0_20 = arith.constant 0 : index
    %c0_21 = arith.constant 0 : index
    %c0_22 = arith.constant 0 : index
    %55 = vector.load %arg5[%c0_20, %c0_21, %c0_22] : memref<1x16x1xf32, #tpu.memory_space<vmem>>, vector<1x16x1xf32>
    %56 = vector.shape_cast %55 : vector<1x16x1xf32> to vector<16x1xf32>
    %57 = vector.broadcast %56 : vector<16x1xf32> to vector<16x128xf32>
    %58 = arith.mulf %54, %57 : vector<16x128xf32>
    %59 = arith.addf %52, %58 : vector<16x128xf32>
    %60 = vector.shape_cast %59 : vector<16x128xf32> to vector<1x16x128xf32>
    %c0_23 = arith.constant 0 : index
    %c0_24 = arith.constant 0 : index
    %c0_25 = arith.constant 0 : index
    %61 = vector.load %arg6[%c0_23, %c0_24, %c0_25] : memref<1x16x128xf32, #tpu.memory_space<vmem>>, vector<1x16x128xf32>
    tpu.vector_store %arg6[%c0_23, %c0_24, %c0_25], %60 {strides = array<i32>} : memref<1x16x128xf32, #tpu.memory_space<vmem>>, vector<1x16x128xf32>,
    return
  }
  func.func @transform_0(%arg0: i32) -> (i32, i32, i32) {
    %c0_i32 = arith.constant 0 : i32
    %c0_i32_0 = arith.constant 0 : i32
    %c0_i32_1 = arith.constant 0 : i32
    return %arg0, %c0_i32, %c0_i32_0 : i32, i32, i32
  }
  func.func @transform_1(%arg0: i32) -> (i32, i32) {
    %c0_i32 = arith.constant 0 : i32
    %c0_i32_0 = arith.constant 0 : i32
    %c0_i32_1 = arith.constant 0 : i32
    return %c0_i32, %c0_i32_0 : i32, i32
  }
  func.func @transform_2(%arg0: i32) -> (i32, i32) {
    %c0_i32 = arith.constant 0 : i32
    %c0_i32_0 = arith.constant 0 : i32
    %c0_i32_1 = arith.constant 0 : i32
    return %c0_i32, %c0_i32_0 : i32, i32
  }
  func.func @transform_3(%arg0: i32) -> (i32, i32) {
    %c0_i32 = arith.constant 0 : i32
    %c0_i32_0 = arith.constant 0 : i32
    %c0_i32_1 = arith.constant 0 : i32
    return %c0_i32, %c0_i32_0 : i32, i32
  }
  func.func @transform_4(%arg0: i32) -> (i32, i32, i32) {
    %c0_i32 = arith.constant 0 : i32
    %c0_i32_0 = arith.constant 0 : i32
    %c0_i32_1 = arith.constant 0 : i32
    %c0_i32_2 = arith.constant 0 : i32
    return %c0_i32, %c0_i32_0, %c0_i32_1 : i32, i32, i32
  }
  func.func @transform_5(%arg0: i32) -> (i32, i32, i32) {
    %c0_i32 = arith.constant 0 : i32
    %c0_i32_0 = arith.constant 0 : i32
    %c0_i32_1 = arith.constant 0 : i32
    return %arg0, %c0_i32, %c0_i32_0 : i32, i32, i32
  }
}

module attributes {stable_mosaic.version = 11 : i64} {
  func.func @_attention_kernel(%arg0: i32, %arg1: memref<1x16x8xf32, #tpu.memory_space<vmem>>, %arg2: memref<16x8xf32, #tpu.memory_space<vmem>>, %arg3: memref<8x16xbf16, #tpu.memory_space<vmem>>, %arg4: memref<16x256xbf16, #tpu.memory_space<vmem>>, %arg5: memref<1x16x1xf32, #tpu.memory_space<vmem>>, %arg6: memref<1x16x128xf32, #tpu.memory_space<vmem>>) attributes {dimension_semantics = [#tpu.dimension_semantics<parallel>], iteration_bounds = array<i64: 2>, scalar_prefetch = 0 : i64, scratch_operands = 0 : i64, tpu.core_type = #tpu.core_type<tc>, window_params = [{transform_indices = @transform_0, window_bounds = array<i64: 1, 16, 8>}, {pipeline_mode = #tpu.pipeline_mode<synchronous>, transform_indices = @transform_1, window_bounds = array<i64: 16, 8>}, {pipeline_mode = #tpu.pipeline_mode<synchronous>, transform_indices = @transform_2, window_bounds = array<i64: 8, 16>}, {pipeline_mode = #tpu.pipeline_mode<synchronous>, transform_indices = @transform_3, window_bounds = array<i64: 16, 256>}, {pipeline_mode = #tpu.pipeline_mode<synchronous>, transform_indices = @transform_4, window_bounds = array<i64: 1, 16, 1>}, {transform_indices = @transform_5, window_bounds = array<i64: 1, 16, 128>}]} {
    %c0 = arith.constant 0 : index
    %c0_0 = arith.constant 0 : index
    %c0_1 = arith.constant 0 : index
    %0 = vector.load %arg1[%c0, %c0_0, %c0_1] : memref<1x16x8xf32, #tpu.memory_space<vmem>>, vector<1x16x8xf32>
    %c0_2 = arith.constant 0 : index
    %c0_3 = arith.constant 0 : index
    %1 = vector.load %arg2[%c0_2, %c0_3] : memref<16x8xf32, #tpu.memory_space<vmem>>, vector<16x8xf32>
    %2 = vector.shape_cast %1 : vector<16x8xf32> to vector<1x16x8xf32>
    %3 = arith.addf %0, %2 : vector<1x16x8xf32>
    %4 = vector.shape_cast %3 : vector<1x16x8xf32> to vector<16x8xf32>
    %cst = arith.constant 0.000000e+00 : f32
    %5 = vector.broadcast %cst : f32 to vector<16x8xf32>
    %6 = arith.maximumf %4, %5 : vector<16x8xf32>
    %7 = arith.truncf %6 : vector<16x8xf32> to vector<16x8xbf16>
    %c0_4 = arith.constant 0 : index
    %c0_5 = arith.constant 0 : index
    %8 = vector.load %arg3[%c0_4, %c0_5] : memref<8x16xbf16, #tpu.memory_space<vmem>>, vector<8x16xbf16>
    %cst_6 = arith.constant dense<0.000000e+00> : vector<16x16xf32>
    %9 = tpu.matmul %7, %8, %cst_6 {dimension_numbers = #tpu.dot_dimension_numbers<[1], [0], [0], [1], [0, 0, 1, 1], [], []>} : vector<16x8xbf16>, vector<8x16xbf16>, vector<16x16xf32> -> vector<16x16xf32>
    %cst_7 = arith.constant dense<0xFF800000> : vector<16xf32>
    %10 = vector.multi_reduction <maximumf>, %9, %cst_7 [1] : vector<16x16xf32> to vector<16xf32>
    %11 = vector.shape_cast %10 : vector<16xf32> to vector<16x1xf32>
    %12 = vector.broadcast %11 : vector<16x1xf32> to vector<16x16xf32>
    %13 = arith.subf %9, %12 : vector<16x16xf32>
    %cst_8 = arith.constant dense<0.000000e+00> : vector<16xf32>
    %14 = vector.multi_reduction <add>, %13, %cst_8 [1] : vector<16x16xf32> to vector<16xf32>
    %15 = vector.shape_cast %14 : vector<16xf32> to vector<16x1xf32>
    %16 = arith.mulf %13, %13 : vector<16x16xf32>
    %cst_9 = arith.constant dense<0.000000e+00> : vector<16xf32>
    %17 = vector.multi_reduction <add>, %16, %cst_9 [1] : vector<16x16xf32> to vector<16xf32>
    %18 = vector.shape_cast %17 : vector<16xf32> to vector<16x1xf32>
    %19 = arith.mulf %15, %15 : vector<16x1xf32>
    %cst_10 = arith.constant 6.250000e-02 : f32
    %20 = vector.broadcast %cst_10 : f32 to vector<16x1xf32>
    %21 = arith.mulf %19, %20 : vector<16x1xf32>
    %22 = arith.subf %18, %21 : vector<16x1xf32>
    %cst_11 = arith.constant 0.0666666701 : f32
    %23 = vector.broadcast %cst_11 : f32 to vector<16x1xf32>
    %24 = arith.mulf %22, %23 : vector<16x1xf32>
    %cst_12 = arith.constant 0.000000e+00 : f32
    %25 = vector.broadcast %cst_12 : f32 to vector<16x1xf32>
    %26 = arith.maximumf %24, %25 : vector<16x1xf32>
    %27 = math.sqrt %26 : vector<16x1xf32>
    %cst_13 = arith.constant 9.99999974E-6 : f32
    %28 = vector.broadcast %cst_13 : f32 to vector<16x1xf32>
    %29 = arith.addf %27, %28 : vector<16x1xf32>
    %30 = tpu.reciprocal %29 {approx = true} : vector<16x1xf32> -> vector<16x1xf32>
    %31 = arith.mulf %29, %30 : vector<16x1xf32>
    %cst_14 = arith.constant 2.000000e+00 : f32
    %32 = vector.broadcast %cst_14 : f32 to vector<16x1xf32>
    %33 = arith.subf %32, %31 : vector<16x1xf32>
    %34 = arith.mulf %30, %33 : vector<16x1xf32>
    %35 = vector.broadcast %34 : vector<16x1xf32> to vector<16x16xf32>
    %36 = arith.mulf %13, %35 : vector<16x16xf32>
    %37 = arith.truncf %36 : vector<16x16xf32> to vector<16x16xbf16>
    %38 = math.exp %37 : vector<16x16xbf16>
    %39 = arith.extf %38 : vector<16x16xbf16> to vector<16x16xf32>
    %cst_15 = arith.constant dense<0.000000e+00> : vector<16xf32>
    %40 = vector.multi_reduction <add>, %39, %cst_15 [1] : vector<16x16xf32> to vector<16xf32>
    %41 = vector.shape_cast %40 : vector<16xf32> to vector<16x1xf32>
    %42 = tpu.reciprocal %41 {approx = true} : vector<16x1xf32> -> vector<16x1xf32>
    %43 = arith.mulf %41, %42 : vector<16x1xf32>
    %cst_16 = arith.constant 2.000000e+00 : f32
    %44 = vector.broadcast %cst_16 : f32 to vector<16x1xf32>
    %45 = arith.subf %44, %43 : vector<16x1xf32>
    %46 = arith.mulf %42, %45 : vector<16x1xf32>
    %47 = vector.broadcast %46 : vector<16x1xf32> to vector<16x16xf32>
    %48 = arith.mulf %39, %47 : vector<16x16xf32>
    %49 = arith.truncf %48 : vector<16x16xf32> to vector<16x16xbf16>
    %c0_17 = arith.constant 0 : index
    %c0_18 = arith.constant 0 : index
    %50 = vector.load %arg4[%c0_17, %c0_18] : memref<16x256xbf16, #tpu.memory_space<vmem>>, vector<16x256xbf16>
    %cst_19 = arith.constant dense<0.000000e+00> : vector<16x256xf32>
    %51 = tpu.matmul %49, %50, %cst_19 {dimension_numbers = #tpu.dot_dimension_numbers<[1], [0], [0], [1], [0, 0, 1, 1], [], []>} : vector<16x16xbf16>, vector<16x256xbf16>, vector<16x256xf32> -> vector<16x256xf32>
    %52 = vector.extract_strided_slice %51 {offsets = [0, 128], sizes = [16, 128], strides = [1, 1]} : vector<16x256xf32> to vector<16x128xf32>
    %53 = vector.extract_strided_slice %51 {offsets = [0, 0], sizes = [16, 128], strides = [1, 1]} : vector<16x256xf32> to vector<16x128xf32>
    %c1_i32 = arith.constant 1 : i32
    %54 = tpu.dynamic_rotate %53 by %c1_i32 dim 0 : vector<16x128xf32>, i32 -> vector<16x128xf32>
    %c0_20 = arith.constant 0 : index
    %c0_21 = arith.constant 0 : index
    %c0_22 = arith.constant 0 : index
    %55 = vector.load %arg5[%c0_20, %c0_21, %c0_22] : memref<1x16x1xf32, #tpu.memory_space<vmem>>, vector<1x16x1xf32>
    %56 = vector.shape_cast %55 : vector<1x16x1xf32> to vector<16x1xf32>
    %57 = vector.broadcast %56 : vector<16x1xf32> to vector<16x128xf32>
    %58 = arith.mulf %54, %57 : vector<16x128xf32>
    %59 = arith.addf %52, %58 : vector<16x128xf32>
    %60 = vector.shape_cast %59 : vector<16x128xf32> to vector<1x16x128xf32>
    %c0_23 = arith.constant 0 : index
    %c0_24 = arith.constant 0 : index
    %c0_25 = arith.constant 0 : index
    %61 = vector.load %arg6[%c0_23, %c0_24, %c0_25] : memref<1x16x128xf32, #tpu.memory_space<vmem>>, vector<1x16x128xf32>
    tpu.vector_store %arg6[%c0_23, %c0_24, %c0_25], %60 {strides = array<i32>} : memref<1x16x128xf32, #tpu.memory_space<vmem>>, vector<1x16x128xf32>,
    return
  }
  func.func @transform_0(%arg0: i32) -> (i32, i32, i32) {
    %c0_i32 = arith.constant 0 : i32
    %c0_i32_0 = arith.constant 0 : i32
    %c0_i32_1 = arith.constant 0 : i32
    return %arg0, %c0_i32, %c0_i32_0 : i32, i32, i32
  }
  func.func @transform_1(%arg0: i32) -> (i32, i32) {
    %c0_i32 = arith.constant 0 : i32
    %c0_i32_0 = arith.constant 0 : i32
    %c0_i32_1 = arith.constant 0 : i32
    return %c0_i32, %c0_i32_0 : i32, i32
  }
  func.func @transform_2(%arg0: i32) -> (i32, i32) {
    %c0_i32 = arith.constant 0 : i32
    %c0_i32_0 = arith.constant 0 : i32
    %c0_i32_1 = arith.constant 0 : i32
    return %c0_i32, %c0_i32_0 : i32, i32
  }
  func.func @transform_3(%arg0: i32) -> (i32, i32) {
    %c0_i32 = arith.constant 0 : i32
    %c0_i32_0 = arith.constant 0 : i32
    %c0_i32_1 = arith.constant 0 : i32
    return %c0_i32, %c0_i32_0 : i32, i32
  }
  func.func @transform_4(%arg0: i32) -> (i32, i32, i32) {
    %c0_i32 = arith.constant 0 : i32
    %c0_i32_0 = arith.constant 0 : i32
    %c0_i32_1 = arith.constant 0 : i32
    %c0_i32_2 = arith.constant 0 : i32
    return %c0_i32, %c0_i32_0, %c0_i32_1 : i32, i32, i32
  }
  func.func @transform_5(%arg0: i32) -> (i32, i32, i32) {
    %c0_i32 = arith.constant 0 : i32
    %c0_i32_0 = arith.constant 0 : i32
    %c0_i32_1 = arith.constant 0 : i32
    return %arg0, %c0_i32, %c0_i32_0 : i32, i32, i32
  }
}

</mosaic_0001>

<bundles_post_ra>
// kernel: tpu_custom_call.1
= control target key start
LH: loop header
LB: loop body
LE: loop exit
PB: predicated region body
PF: predicated region fallthrough
CT: control target
= control target key end

     0   :  { %10 = vsyncpa [#allocation3], 0  ;;  %s843_s0 = inlined_call_operand.vmem [shape: f32[2,16,8], index: 0, kind: input, shape index: {}]   ;;  %s844_s1 = inlined_call_operand.vmem [shape: f32[16,8], index: 1, kind: input, shape index: {}]   ;;  %s845_s2 = inlined_call_operand.vmem [shape: bf16[8,16], index: 2, kind: input, shape index: {}]   ;;  %s846_s3 = inlined_call_operand.vmem [shape: bf16[16,256], index: 3, kind: input, shape index: {}]   ;;  %s847_s4 = inlined_call_operand.vmem [shape: f32[1,16,1], index: 4, kind: input, shape index: {}]   ;;  %s848_s5 = inlined_call_operand.hbm [shape: f32[2,16,128], index: 5, kind: output, shape index: {}]  }
   0x1   :  { %12 = vsyncpa [#allocation3 + $0x1], 0  ;;  %s711_s18 = smov 0   ;;  %s713_s19 = smov 0  }
   0x2   :  { %s715_s20 = smov 0   ;;  %s717_s21 = smov 0  }
   0x3 LB: > { %s732_s22 = sadd.s32 4294967295, %s673_s21   ;;  %s524_s23 = sadd.s32 4294967294, %s673_s21   ;;  %s673_s21 = sphi %s717_s21, %s854_s21   ;;  %s669_s20 = sphi %s715_s20, %s853_s20   ;;  %s665_s19 = sphi %s713_s19, %s852_s19   ;;  %s661_s18 = sphi %s711_s18, %s851_s18  }
   0x4   : > { %s736_s24 = sadd.s32 1, %s673_s21   ;;  %s135_s25 = sadd.s32 1, %s669_s20 }
   0x5   : > { %s132_s26 = ssub.s32 %s673_s21, %s736_s24  ;;  %p145_p0 = scmp.ne.s32.totalorder %s669_s20, %s665_s19 }
   0x6   : > { %p133_p1 = scmp.eq.s32.totalorder %s132_s26, 0  ;;  %p146_p2 = scmp.eq.s32.totalorder %s732_s22, 1 }
   0x7   : > { %p151_p3 = scmp.ne.s32.totalorder %s665_s19, %s661_s18  ;;  %p152_p4 = scmp.eq.s32.totalorder %s524_s23, 1 }
   0x8   : > { %s747_s27 = scalar_select %p133_p1, %s669_s20, %s135_s25  }
   0x9   : > { %p749_p5 = por %p146_p2, %p145_p0  ;;  %p753_p6 = por %p152_p4, %p151_p3 }
   0xa   : > { %p527_p7 = scmp.ge.s32.totalorder %s673_s21, 1  ;;  %p190_p8 = scmp.lt.s32.totalorder %s673_s21, 3 }
   0xc   : > { %p191_p9 = pnand %p527_p7, %p190_p8 }
   0xd   : > { %p218_p10 = scmp.lt.s32.totalorder (!%p191_p9), %s732_s22, 1  ;;  %s541_s12 = sshll.u32 (!%p191_p9), %s732_s22, 8 }
   0xe   : > { %194 = sbr.rel (%p191_p9) target bundleno = 962 (0x3c2), region = 40  ;;  %s678_s17 = smov (!%p191_p9), [#allocation2]  }
   0xf   : > { %s617_s23 = sshll.u32 (!%p191_p9), %s678_s17, 4  ;;  %s618_s23 = int_to_ptr.vmem [resolvable:$false] %s617_s23 }
  0x10   : > { %s619_s25 = scalar_lea.vmem (!%p191_p9), %s618_s23, 512 }
  0x13   : > { %v233_v0 = vld [vmem:[%s845_s2] sm:$0xf]  ;;  %vm238_vm0 = vcmask 1043456   ;;  %v675_v1 = vmov 0.0   ;;  %vm676_vm1 = vmmov 0   ;;  %s219_s7 = scalar_select %p218_p10, %s732_s22, 1 }
  0x14   : > { %544 = vmatprep.subr.bf16.mxu0 %v675_v1  ;;  %v240_v2 = vsel %vm238_vm0, %v233_v0, 0  ;;  %546 = vmatprep.mubr.msk.bf16.mxu0 %vm676_vm1, %v675_v1  ;;  %v226_v3 = vld [vmem:[%s844_s1] sm:$0xff]  ;;  %v227_v4 = vld [vmem:[%s844_s1 + $0x8] sm:$0xff]  ;;  %vm234_vm2 = vcmask 64512   ;;  %vm283_vm3 = vcmask 130048  }
  0x15   : > { %545 = vmatpush3.bf16.msra.mxu0 %v240_v2  ;;  %s540_s8 = sshll.u32 %s219_s7, 4 }
  0x16   : > { %s222_s15 = scalar_lea.vmem %s843_s0, %s540_s8  ;;  %s215_s8 = sand.u32 1, %s665_s19  }
  0x17   : > { %v224_v5 = vld [vmem:[%s222_s15] sm:$0xff]  ;;  %v225_v6 = vld [vmem:[%s222_s15 + $0x8] sm:$0xff]  ;;  %s528_s9 = sshll.u32 %s215_s8, 4  ;;  %s801_s15 = scalar_lea.hbm %s848_s5, %s541_s12 }
  0x18   : > { %v228_v7 = vadd.f32 %v226_v3, %v224_v5  ;;  %v229_v8 = vadd.f32 %v227_v4, %v225_v6  ;;  %s217_s10 = scalar_lea.vmem [#allocation2], %s528_s9  ;;  %s803_s22 = scalar_lea.sflag [#allocation3], %s215_s8 }
  0x19   : > { %s462_s11 = sshll.u32 %s217_s10, 4  ;;  %s796_s11 = int_to_ptr.vmem [resolvable:$true] %s462_s11 }
  0x1a   : > { %v230_v9 = vmax.f32 %v228_v7, 0.0  ;;  %v231_v10 = vmax.f32 %v229_v8, 0.0  ;;  %v596_v7 = vld [vmem:[%s846_s3 + $0x4] ss:$8 sps:$4 sm:$0xff]   ;;  %v598_v8 = vld [vmem:[%s846_s3] ss:$8 sps:$4 sm:$0xff]   ;;  %p620_p0 = scmp.lt.s32.totalorder %s796_s11, %s618_s23 }
  0x1b   : > { %394 = vmatprep.subr.bf16.mxu1 %v596_v7  ;;  %s613_s16 = scalar_lea.vmem %s796_s11, 256 }
  0x1c   : > { %v232_v11 = vpack.c.bf16 %v231_v10, %v230_v9  ;;  %395 = vmatpush1.bf16.msra.mxu1 %v598_v8  ;;  %v677_v9 = vmov 0   ;;  %v431_v10 = vld [vmem:[%s847_s4 + $0x8] sm:$0xff]  ;;  %p614_p11 = scmp.ne.s32.totalorder %s796_s11, %s613_s16  ;;  %p621_p1 = scmp.lt.s32.totalorder %s619_s25, %s613_s16 }
  0x1d   : > { %412 = vmatprep.mubr.bf16.mxu1 %v677_v9  ;;  %595 = vset.pattern.permute.xlu1 %v677_v9 }
  0x1e   : > { %547 = vmatmul.mubr.msk.bf16.vlgmr.msra.gmra.mxu0 %vm234_vm2, %v232_v11  ;;  %594 = vset.pattern.permute.xlu0 %v677_v9  ;;  %v430_v11 = vld [vmem:[%s847_s4] sm:$0xff]  ;;  %p615_p12 = pnand %p614_p11, %p749_p5  ;;  %p622_p2 = por %p621_p1, %p620_p0 }
  0x20   : > { %p616_p13 = pneg %p615_p12 }
  0x22   : > { %p623_p3 = pnand %p622_p2, %p616_p13 }
  0xde   : > { %v276_v12 = vpop.f32.mrf.mxu0 }
  0xdf   : > { %v284_v13 = vsel %vm283_vm3, %v276_v12, -inf }
  0xe0   : > { %285 = vmax.xlane.f32.xlu0 %v284_v13  ;;  %v548_v14 = vpop.f32.mrf.mxu0 }
  0xe2   : > { %v279_v15 = vpop.f32.mrf.mxu0 }
  0xe3   : > { %v287_v16 = vsel %vm283_vm3, %v279_v15, -inf }
  0xe4   : > { %288 = vmax.xlane.f32.xlu0 %v287_v16  ;;  %v549_v17 = vpop.f32.mrf.mxu0 }
 0x169   : > { %v286_v18 = vpop.xlane.xlu0 %285 }
 0x16a   : > { %v290_v19 = vsub.f32 %v276_v12, %v286_v18 }
 0x16c   : > { %v292_v20 = vsel %vm283_vm3, %v290_v19, 0.0  ;;  %v298_v21 = vmul.f32 %v290_v19, %v290_v19 }
 0x16d   : > { %293 = vadd.xlane.f32.xlu1 %v292_v20  ;;  %v289_v22 = vpop.xlane.xlu0 %288 }
 0x16e   : > { %v291_v23 = vsub.f32 %v279_v15, %v289_v22  ;;  %v300_v24 = vsel %vm283_vm3, %v298_v21, 0.0 }
 0x16f   : > { %301 = vadd.xlane.f32.xlu0 %v300_v24 }
 0x170   : > { %v295_v25 = vsel %vm283_vm3, %v291_v23, 0.0  ;;  %v299_v26 = vmul.f32 %v291_v23, %v291_v23 }
 0x171   : > { %296 = vadd.xlane.f32.xlu1 %v295_v25  ;;  %v425_v25 = vlaneseq }
 0x172   : > { %v303_v27 = vsel %vm283_vm3, %v299_v26, 0.0 }
 0x175   : > { %304 = vadd.xlane.f32.xlu1 %v303_v27  ;;  %v426_v27 = vshrl.u32 %v425_v25, 7 }
 0x177   : > { %vm427_vm8 = vcmp.lt.s32.totalorder %v426_v27, 1 }
 0x1f6   : > { %v294_v28 = vpop.xlane.xlu1 %293 }
 0x1f7   : > { %v306_v29 = vmul.f32 %v294_v28, %v294_v28 }
 0x1f8   : > { %v302_v31 = vpop.xlane.xlu0 %301 }
 0x1f9   : > { %v308_v30 = vmul.f32 0.0625, %v306_v29 }
 0x1fa   : > { %v297_v32 = vpop.xlane.xlu1 %296 }
 0x1fb   : > { %v310_v33 = vsub.f32 %v302_v31, %v308_v30  ;;  %v307_v34 = vmul.f32 %v297_v32, %v297_v32 }
 0x1fd   : > { %v312_v35 = vmul.f32 0.06666667, %v310_v33  ;;  %v309_v36 = vmul.f32 0.0625, %v307_v34 }
 0x1fe   : > { %v305_v37 = vpop.xlane.xlu1 %304 }
 0x1ff   : > { %v314_v38 = vmax.f32 %v312_v35, 0.0  ;;  %v311_v39 = vsub.f32 %v305_v37, %v309_v36 }
 0x201   : > { %599 = vrsqrt.f32 %v314_v38  ;;  %v313_v40 = vmul.f32 0.06666667, %v311_v39  ;;  %vm318_vm4 = vcmp.eq.f32.partialorder %v314_v38, inf  ;;  %v321_v44 = vand.u32 2147483648, %v314_v38 }
 0x202   : > { %vm320_vm5 = vcmp.eq.f32.partialorder %v314_v38, 0.0 }
 0x203   : > { %v315_v41 = vmax.f32 %v313_v40, 0.0 }
 0x205   : > { %601 = vrsqrt.f32 %v315_v41  ;;  %vm325_vm6 = vcmp.eq.f32.partialorder %v315_v41, inf  ;;  %v328_v50 = vand.u32 2147483648, %v315_v41  ;;  %vm327_vm7 = vcmp.eq.f32.partialorder %v315_v41, 0.0 }
 0x20e   : > { %v600_v42 = vpop.eup %599 }
 0x20f   : > { %v317_v43 = vmul.f32 %v600_v42, %v314_v38 }
 0x211   : > { %v319_v45 = vsel %vm318_vm4, %v314_v38, %v317_v43 }
 0x212   : > { %v322_v46 = vsel %vm320_vm5, %v321_v44, %v319_v45  ;;  %v602_v47 = vpop.eup %601 }
 0x213   : > { %v330_v48 = vadd.f32 1e-05, %v322_v46  ;;  %v324_v49 = vmul.f32 %v602_v47, %v315_v41 }
 0x215   : > { %603 = vrcp.f32 %v330_v48  ;;  %v326_v51 = vsel %vm325_vm6, %v315_v41, %v324_v49 }
 0x216   : > { %v329_v52 = vsel %vm327_vm7, %v328_v50, %v326_v51 }
 0x217   : > { %v331_v53 = vadd.f32 1e-05, %v329_v52 }
 0x219   : > { %605 = vrcp.f32 %v331_v53 }
 0x222   : > { %v604_v54 = vpop.eup %603 }
 0x223   : > { %v334_v55 = vmul.f32 %v604_v54, %v330_v48 }
 0x225   : > { %v336_v56 = vsub.f32 2.0, %v334_v55 }
 0x226   : > { %v606_v57 = vpop.eup %605 }
 0x227   : > { %v335_v58 = vmul.f32 %v606_v57, %v331_v53  ;;  %v338_v60 = vmul.f32 %v604_v54, %v336_v56 }
 0x229   : > { %v337_v59 = vsub.f32 2.0, %v335_v58  ;;  %v340_v62 = vmul.f32 %v338_v60, %v290_v19 }
 0x22b   : > { %v339_v61 = vmul.f32 %v606_v57, %v337_v59 }
 0x22d   : > { %v341_v63 = vmul.f32 %v339_v61, %v291_v23 }
 0x22f   : > { %v342_v0 = vpack.c.bf16 %v341_v63, %v340_v62 }
 0x231   : > { %v344_v1 = vmul.bf16 1069105081, %v342_v0 }
 0x233   : > { %607 = vpow.bf16 %v344_v1 }
 0x241   : > { %v608_v2 = vpop.eup %607 }
 0x242   : > { %v347_v3 = vunpack.c.h.bf16 %v608_v2  ;;  %v346_v4 = vunpack.c.l.bf16 %v608_v2 }
 0x244   : > { %v351_v5 = vsel %vm283_vm3, %v347_v3, 0.0  ;;  %v348_v6 = vsel %vm283_vm3, %v346_v4, 0.0 }
 0x245   : > { %352 = vadd.xlane.f32.xlu1 %v351_v5  ;;  %349 = vadd.xlane.f32.xlu0 %v348_v6 }
 0x256   : > { %439 = vperm.xlu1 %595, %v431_v10  }
 0x25b   : > { %434 = vperm.xlu0 %594, %v430_v11  }
 0x2ce   : > { %v353_v12 = vpop.xlane.xlu1 %352  ;;  %v350_v13 = vpop.xlane.xlu0 %349 }
 0x2cf   : > { %609 = vrcp.f32 %v353_v12 }
 0x2d0   : > { %611 = vrcp.f32 %v350_v13 }
 0x2d2   : > { %v440_v32 = vpop.permute.xlu1 %439 }
 0x2d6   : > { %v435_v33 = vpop.permute.xlu0 %434 }
 0x2dc   : > { %v610_v14 = vpop.eup %609 }
 0x2dd   : > { %v612_v15 = vpop.eup %611  ;;  %v357_v16 = vmul.f32 %v610_v14, %v353_v12 }
 0x2de   : > { %v356_v17 = vmul.f32 %v612_v15, %v350_v13 }
 0x2df   : > { %v359_v18 = vsub.f32 2.0, %v357_v16 }
 0x2e0   : > { %v358_v19 = vsub.f32 2.0, %v356_v17 }
 0x2e1   : > { %v361_v20 = vmul.f32 %v610_v14, %v359_v18 }
 0x2e2   : > { %v360_v21 = vmul.f32 %v612_v15, %v358_v19 }
 0x2e3   : > { %v363_v22 = vmul.f32 %v361_v20, %v347_v3 }
 0x2e4   : > { %v362_v23 = vmul.f32 %v360_v21, %v346_v4 }
 0x2e6   : > { %v364_v24 = vpack.c.bf16 %v363_v22, %v362_v23 }
 0x2e8   : > { %534 = vmatmul.mubr.msk.bf16.vlgmr.msra.gmra.mxu1 %vm283_vm3, %v364_v24 }
 0x3a8   : > { %v414_v26 = vpop.f32.mrf.mxu1 }
 0x3a9   : > { %v423_v30 = vrot.slane %v414_v26, 7 }
 0x3aa   : > { %v416_v28 = vpop.f32.mrf.mxu1 }
 0x3ac   : > { %v418_v29 = vpop.f32.mrf.mxu1 }
 0x3ad   : > { %v424_v31 = vrot.slane %v418_v29, 7 }
 0x3ae   : > { %v420_v38 = vpop.f32.mrf.mxu1 }
 0x3af   : > { %v428_v34 = vsel %vm427_vm8, %v423_v30, %v424_v31  ;;  %v429_v35 = vsel %vm427_vm8, %v424_v31, %v423_v30 }
 0x3b0   : > { %v443_v36 = vmul.f32 %v440_v32, %v428_v34  ;;  %v442_v37 = vmul.f32 %v435_v33, %v429_v35 }
 0x3b2   : > { %v445_v39 = vadd.f32 %v443_v36, %v420_v38  ;;  %v444_v40 = vadd.f32 %v442_v37, %v416_v28 }
 0x3b4   : > { %447 = vst [vmem:[%s217_s10 + $0x8] sm:$0xff] %v445_v39  ;;  %446 = vst [vmem:[%s217_s10] sm:$0xff] %v444_v40 }
 0x3b5   : > { %626 = shalt.err (!%p623_p3)
}
 0x3b6   : > { %s627_s26 = scalar_lea.hbm %s801_s15, 256  ;;  %s631_s7 = scalar_lea.hbm %s848_s5, 512 }
 0x3b7   : > { %p628_p4 = scmp.ne.s32.totalorder %s801_s15, %s627_s26  ;;  %p632_p9 = scmp.lt.s32.totalorder %s801_s15, %s848_s5 }
 0x3b8   : > { %p633_p10 = scmp.lt.s32.totalorder %s631_s7, %s627_s26 }
 0x3b9   : > { %p629_p7 = pnand %p628_p4, %p749_p5 }
 0x3ba   : > { %p634_p11 = por %p633_p10, %p632_p9 }
 0x3bb   : > { %p630_p8 = pneg %p629_p7 }
 0x3bd   : > { %p635_p12 = pnand %p634_p11, %p630_p8 }
 0x3bf   : > { %638 = shalt.err (!%p635_p12)
}
 0x3c0   : > { %s679_s10 = smov 128   ;;  %s680_s12 = smov 8  }
 0x3c1   : > { %550 = dma.vmem_to_hbm [thread:$0]  (%p749_p5), %s796_s11, 256, %s801_s15, %s803_s22, %s679_s10, %s679_s10, %s680_s12  }
 0x3c2 PF: > { %p556_p13 = scmp.ge.s32.totalorder %s673_s21, 2  ;;  %s477_s13 = sand.u32 1, %s661_s18  }
 0x3c3   : > { %s478_s14 = scalar_lea.sflag [#allocation3], %s477_s13 }
 0x3c4   : > { %p553_p0 = pnand %p556_p13, %p753_p6 }
 0x3c6   : > { %p554_p1 = pneg %p553_p0 }
 0x3c8   : > { %656 = dma.done.wait (%p554_p1), %s478_s14, 256  }
 0x3c9   : > { %658 = vsyncadd (%p554_p1), %s478_s14, 4294967040  ;;  %p15_p2 = scmp.ge.s32.totalorder %s736_s24, 4   ;;  %s851_s18 = smov %s665_s19 }
 0x3ca   : > { %s852_s19 = smov %s669_s20  ;;  %s853_s20 = smov %s747_s27 }
 0x3cb   : > { %s854_s21 = smov %s736_s24  ;;  %17 = sbr.rel (!%p15_p2) target bundleno = 3 (0x3), region = 75 }
 0x3d0   :  { %483 = vsyncpa [#allocation3], 1 }
 0x3d1   :  { %485 = vsyncpa [#allocation3 + $0x1], 1 }

// kernel: tpu_custom_call.1
= control target key start
LH: loop header
LB: loop body
LE: loop exit
PB: predicated region body
PF: predicated region fallthrough
CT: control target
= control target key end

     0   :  { %10 = vsyncpa [#allocation3], 0  ;;  %s843_s0 = inlined_call_operand.vmem [shape: f32[2,16,8], index: 0, kind: input, shape index: {}]   ;;  %s844_s1 = inlined_call_operand.vmem [shape: f32[16,8], index: 1, kind: input, shape index: {}]   ;;  %s845_s2 = inlined_call_operand.vmem [shape: bf16[8,16], index: 2, kind: input, shape index: {}]   ;;  %s846_s3 = inlined_call_operand.vmem [shape: bf16[16,256], index: 3, kind: input, shape index: {}]   ;;  %s847_s4 = inlined_call_operand.vmem [shape: f32[1,16,1], index: 4, kind: input, shape index: {}]   ;;  %s848_s5 = inlined_call_operand.hbm [shape: f32[2,16,128], index: 5, kind: output, shape index: {}]  }
   0x1   :  { %12 = vsyncpa [#allocation3 + $0x1], 0  ;;  %s711_s18 = smov 0   ;;  %s713_s19 = smov 0  }
   0x2   :  { %s715_s20 = smov 0   ;;  %s717_s21 = smov 0  }
   0x3 LB: > { %s732_s22 = sadd.s32 4294967295, %s673_s21   ;;  %s524_s23 = sadd.s32 4294967294, %s673_s21   ;;  %s673_s21 = sphi %s717_s21, %s854_s21   ;;  %s669_s20 = sphi %s715_s20, %s853_s20   ;;  %s665_s19 = sphi %s713_s19, %s852_s19   ;;  %s661_s18 = sphi %s711_s18, %s851_s18  }
   0x4   : > { %s736_s24 = sadd.s32 1, %s673_s21   ;;  %s135_s25 = sadd.s32 1, %s669_s20 }
   0x5   : > { %s132_s26 = ssub.s32 %s673_s21, %s736_s24  ;;  %p145_p0 = scmp.ne.s32.totalorder %s669_s20, %s665_s19 }
   0x6   : > { %p133_p1 = scmp.eq.s32.totalorder %s132_s26, 0  ;;  %p146_p2 = scmp.eq.s32.totalorder %s732_s22, 1 }
   0x7   : > { %p151_p3 = scmp.ne.s32.totalorder %s665_s19, %s661_s18  ;;  %p152_p4 = scmp.eq.s32.totalorder %s524_s23, 1 }
   0x8   : > { %s747_s27 = scalar_select %p133_p1, %s669_s20, %s135_s25  }
   0x9   : > { %p749_p5 = por %p146_p2, %p145_p0  ;;  %p753_p6 = por %p152_p4, %p151_p3 }
   0xa   : > { %p527_p7 = scmp.ge.s32.totalorder %s673_s21, 1  ;;  %p190_p8 = scmp.lt.s32.totalorder %s673_s21, 3 }
   0xc   : > { %p191_p9 = pnand %p527_p7, %p190_p8 }
   0xd   : > { %p218_p10 = scmp.lt.s32.totalorder (!%p191_p9), %s732_s22, 1  ;;  %s541_s12 = sshll.u32 (!%p191_p9), %s732_s22, 8 }
   0xe   : > { %194 = sbr.rel (%p191_p9) target bundleno = 962 (0x3c2), region = 40  ;;  %s678_s17 = smov (!%p191_p9), [#allocation2]  }
   0xf   : > { %s617_s23 = sshll.u32 (!%p191_p9), %s678_s17, 4  ;;  %s618_s23 = int_to_ptr.vmem [resolvable:$false] %s617_s23 }
  0x10   : > { %s619_s25 = scalar_lea.vmem (!%p191_p9), %s618_s23, 512 }
  0x13   : > { %v233_v0 = vld [vmem:[%s845_s2] sm:$0xf]  ;;  %vm238_vm0 = vcmask 1043456   ;;  %v675_v1 = vmov 0.0   ;;  %vm676_vm1 = vmmov 0   ;;  %s219_s7 = scalar_select %p218_p10, %s732_s22, 1 }
  0x14   : > { %544 = vmatprep.subr.bf16.mxu0 %v675_v1  ;;  %v240_v2 = vsel %vm238_vm0, %v233_v0, 0  ;;  %546 = vmatprep.mubr.msk.bf16.mxu0 %vm676_vm1, %v675_v1  ;;  %v226_v3 = vld [vmem:[%s844_s1] sm:$0xff]  ;;  %v227_v4 = vld [vmem:[%s844_s1 + $0x8] sm:$0xff]  ;;  %vm234_vm2 = vcmask 64512   ;;  %vm283_vm3 = vcmask 130048  }
  0x15   : > { %545 = vmatpush3.bf16.msra.mxu0 %v240_v2  ;;  %s540_s8 = sshll.u32 %s219_s7, 4 }
  0x16   : > { %s222_s15 = scalar_lea.vmem %s843_s0, %s540_s8  ;;  %s215_s8 = sand.u32 1, %s665_s19  }
  0x17   : > { %v224_v5 = vld [vmem:[%s222_s15] sm:$0xff]  ;;  %v225_v6 = vld [vmem:[%s222_s15 + $0x8] sm:$0xff]  ;;  %s528_s9 = sshll.u32 %s215_s8, 4  ;;  %s801_s15 = scalar_lea.hbm %s848_s5, %s541_s12 }
  0x18   : > { %v228_v7 = vadd.f32 %v226_v3, %v224_v5  ;;  %v229_v8 = vadd.f32 %v227_v4, %v225_v6  ;;  %s217_s10 = scalar_lea.vmem [#allocation2], %s528_s9  ;;  %s803_s22 = scalar_lea.sflag [#allocation3], %s215_s8 }
  0x19   : > { %s462_s11 = sshll.u32 %s217_s10, 4  ;;  %s796_s11 = int_to_ptr.vmem [resolvable:$true] %s462_s11 }
  0x1a   : > { %v230_v9 = vmax.f32 %v228_v7, 0.0  ;;  %v231_v10 = vmax.f32 %v229_v8, 0.0  ;;  %v596_v7 = vld [vmem:[%s846_s3 + $0x4] ss:$8 sps:$4 sm:$0xff]   ;;  %v598_v8 = vld [vmem:[%s846_s3] ss:$8 sps:$4 sm:$0xff]   ;;  %p620_p0 = scmp.lt.s32.totalorder %s796_s11, %s618_s23 }
  0x1b   : > { %394 = vmatprep.subr.bf16.mxu1 %v596_v7  ;;  %s613_s16 = scalar_lea.vmem %s796_s11, 256 }
  0x1c   : > { %v232_v11 = vpack.c.bf16 %v231_v10, %v230_v9  ;;  %395 = vmatpush1.bf16.msra.mxu1 %v598_v8  ;;  %v677_v9 = vmov 0   ;;  %v431_v10 = vld [vmem:[%s847_s4 + $0x8] sm:$0xff]  ;;  %p614_p11 = scmp.ne.s32.totalorder %s796_s11, %s613_s16  ;;  %p621_p1 = scmp.lt.s32.totalorder %s619_s25, %s613_s16 }
  0x1d   : > { %412 = vmatprep.mubr.bf16.mxu1 %v677_v9  ;;  %595 = vset.pattern.permute.xlu1 %v677_v9 }
  0x1e   : > { %547 = vmatmul.mubr.msk.bf16.vlgmr.msra.gmra.mxu0 %vm234_vm2, %v232_v11  ;;  %594 = vset.pattern.permute.xlu0 %v677_v9  ;;  %v430_v11 = vld [vmem:[%s847_s4] sm:$0xff]  ;;  %p615_p12 = pnand %p614_p11, %p749_p5  ;;  %p622_p2 = por %p621_p1, %p620_p0 }
  0x20   : > { %p616_p13 = pneg %p615_p12 }
  0x22   : > { %p623_p3 = pnand %p622_p2, %p616_p13 }
  0xde   : > { %v276_v12 = vpop.f32.mrf.mxu0 }
  0xdf   : > { %v284_v13 = vsel %vm283_vm3, %v276_v12, -inf }
  0xe0   : > { %285 = vmax.xlane.f32.xlu0 %v284_v13  ;;  %v548_v14 = vpop.f32.mrf.mxu0 }
  0xe2   : > { %v279_v15 = vpop.f32.mrf.mxu0 }
  0xe3   : > { %v287_v16 = vsel %vm283_vm3, %v279_v15, -inf }
  0xe4   : > { %288 = vmax.xlane.f32.xlu0 %v287_v16  ;;  %v549_v17 = vpop.f32.mrf.mxu0 }
 0x169   : > { %v286_v18 = vpop.xlane.xlu0 %285 }
 0x16a   : > { %v290_v19 = vsub.f32 %v276_v12, %v286_v18 }
 0x16c   : > { %v292_v20 = vsel %vm283_vm3, %v290_v19, 0.0  ;;  %v298_v21 = vmul.f32 %v290_v19, %v290_v19 }
 0x16d   : > { %293 = vadd.xlane.f32.xlu1 %v292_v20  ;;  %v289_v22 = vpop.xlane.xlu0 %288 }
 0x16e   : > { %v291_v23 = vsub.f32 %v279_v15, %v289_v22  ;;  %v300_v24 = vsel %vm283_vm3, %v298_v21, 0.0 }
 0x16f   : > { %301 = vadd.xlane.f32.xlu0 %v300_v24 }
 0x170   : > { %v295_v25 = vsel %vm283_vm3, %v291_v23, 0.0  ;;  %v299_v26 = vmul.f32 %v291_v23, %v291_v23 }
 0x171   : > { %296 = vadd.xlane.f32.xlu1 %v295_v25  ;;  %v425_v25 = vlaneseq }
 0x172   : > { %v303_v27 = vsel %vm283_vm3, %v299_v26, 0.0 }
 0x175   : > { %304 = vadd.xlane.f32.xlu1 %v303_v27  ;;  %v426_v27 = vshrl.u32 %v425_v25, 7 }
 0x177   : > { %vm427_vm8 = vcmp.lt.s32.totalorder %v426_v27, 1 }
 0x1f6   : > { %v294_v28 = vpop.xlane.xlu1 %293 }
 0x1f7   : > { %v306_v29 = vmul.f32 %v294_v28, %v294_v28 }
 0x1f8   : > { %v302_v31 = vpop.xlane.xlu0 %301 }
 0x1f9   : > { %v308_v30 = vmul.f32 0.0625, %v306_v29 }
 0x1fa   : > { %v297_v32 = vpop.xlane.xlu1 %296 }
 0x1fb   : > { %v310_v33 = vsub.f32 %v302_v31, %v308_v30  ;;  %v307_v34 = vmul.f32 %v297_v32, %v297_v32 }
 0x1fd   : > { %v312_v35 = vmul.f32 0.06666667, %v310_v33  ;;  %v309_v36 = vmul.f32 0.0625, %v307_v34 }
 0x1fe   : > { %v305_v37 = vpop.xlane.xlu1 %304 }
 0x1ff   : > { %v314_v38 = vmax.f32 %v312_v35, 0.0  ;;  %v311_v39 = vsub.f32 %v305_v37, %v309_v36 }
 0x201   : > { %599 = vrsqrt.f32 %v314_v38  ;;  %v313_v40 = vmul.f32 0.06666667, %v311_v39  ;;  %vm318_vm4 = vcmp.eq.f32.partialorder %v314_v38, inf  ;;  %v321_v44 = vand.u32 2147483648, %v314_v38 }
 0x202   : > { %vm320_vm5 = vcmp.eq.f32.partialorder %v314_v38, 0.0 }
 0x203   : > { %v315_v41 = vmax.f32 %v313_v40, 0.0 }
 0x205   : > { %601 = vrsqrt.f32 %v315_v41  ;;  %vm325_vm6 = vcmp.eq.f32.partialorder %v315_v41, inf  ;;  %v328_v50 = vand.u32 2147483648, %v315_v41  ;;  %vm327_vm7 = vcmp.eq.f32.partialorder %v315_v41, 0.0 }
 0x20e   : > { %v600_v42 = vpop.eup %599 }
 0x20f   : > { %v317_v43 = vmul.f32 %v600_v42, %v314_v38 }
 0x211   : > { %v319_v45 = vsel %vm318_vm4, %v314_v38, %v317_v43 }
 0x212   : > { %v322_v46 = vsel %vm320_vm5, %v321_v44, %v319_v45  ;;  %v602_v47 = vpop.eup %601 }
 0x213   : > { %v330_v48 = vadd.f32 1e-05, %v322_v46  ;;  %v324_v49 = vmul.f32 %v602_v47, %v315_v41 }
 0x215   : > { %603 = vrcp.f32 %v330_v48  ;;  %v326_v51 = vsel %vm325_vm6, %v315_v41, %v324_v49 }
 0x216   : > { %v329_v52 = vsel %vm327_vm7, %v328_v50, %v326_v51 }
 0x217   : > { %v331_v53 = vadd.f32 1e-05, %v329_v52 }
 0x219   : > { %605 = vrcp.f32 %v331_v53 }
 0x222   : > { %v604_v54 = vpop.eup %603 }
 0x223   : > { %v334_v55 = vmul.f32 %v604_v54, %v330_v48 }
 0x225   : > { %v336_v56 = vsub.f32 2.0, %v334_v55 }
 0x226   : > { %v606_v57 = vpop.eup %605 }
 0x227   : > { %v335_v58 = vmul.f32 %v606_v57, %v331_v53  ;;  %v338_v60 = vmul.f32 %v604_v54, %v336_v56 }
 0x229   : > { %v337_v59 = vsub.f32 2.0, %v335_v58  ;;  %v340_v62 = vmul.f32 %v338_v60, %v290_v19 }
 0x22b   : > { %v339_v61 = vmul.f32 %v606_v57, %v337_v59 }
 0x22d   : > { %v341_v63 = vmul.f32 %v339_v61, %v291_v23 }
 0x22f   : > { %v342_v0 = vpack.c.bf16 %v341_v63, %v340_v62 }
 0x231   : > { %v344_v1 = vmul.bf16 1069105081, %v342_v0 }
 0x233   : > { %607 = vpow.bf16 %v344_v1 }
 0x241   : > { %v608_v2 = vpop.eup %607 }
 0x242   : > { %v347_v3 = vunpack.c.h.bf16 %v608_v2  ;;  %v346_v4 = vunpack.c.l.bf16 %v608_v2 }
 0x244   : > { %v351_v5 = vsel %vm283_vm3, %v347_v3, 0.0  ;;  %v348_v6 = vsel %vm283_vm3, %v346_v4, 0.0 }
 0x245   : > { %352 = vadd.xlane.f32.xlu1 %v351_v5  ;;  %349 = vadd.xlane.f32.xlu0 %v348_v6 }
 0x256   : > { %439 = vperm.xlu1 %595, %v431_v10  }
 0x25b   : > { %434 = vperm.xlu0 %594, %v430_v11  }
 0x2ce   : > { %v353_v12 = vpop.xlane.xlu1 %352  ;;  %v350_v13 = vpop.xlane.xlu0 %349 }
 0x2cf   : > { %609 = vrcp.f32 %v353_v12 }
 0x2d0   : > { %611 = vrcp.f32 %v350_v13 }
 0x2d2   : > { %v440_v32 = vpop.permute.xlu1 %439 }
 0x2d6   : > { %v435_v33 = vpop.permute.xlu0 %434 }
 0x2dc   : > { %v610_v14 = vpop.eup %609 }
 0x2dd   : > { %v612_v15 = vpop.eup %611  ;;  %v357_v16 = vmul.f32 %v610_v14, %v353_v12 }
 0x2de   : > { %v356_v17 = vmul.f32 %v612_v15, %v350_v13 }
 0x2df   : > { %v359_v18 = vsub.f32 2.0, %v357_v16 }
 0x2e0   : > { %v358_v19 = vsub.f32 2.0, %v356_v17 }
 0x2e1   : > { %v361_v20 = vmul.f32 %v610_v14, %v359_v18 }
 0x2e2   : > { %v360_v21 = vmul.f32 %v612_v15, %v358_v19 }
 0x2e3   : > { %v363_v22 = vmul.f32 %v361_v20, %v347_v3 }
 0x2e4   : > { %v362_v23 = vmul.f32 %v360_v21, %v346_v4 }
 0x2e6   : > { %v364_v24 = vpack.c.bf16 %v363_v22, %v362_v23 }
 0x2e8   : > { %534 = vmatmul.mubr.msk.bf16.vlgmr.msra.gmra.mxu1 %vm283_vm3, %v364_v24 }
 0x3a8   : > { %v414_v26 = vpop.f32.mrf.mxu1 }
 0x3a9   : > { %v423_v30 = vrot.slane %v414_v26, 7 }
 0x3aa   : > { %v416_v28 = vpop.f32.mrf.mxu1 }
 0x3ac   : > { %v418_v29 = vpop.f32.mrf.mxu1 }
 0x3ad   : > { %v424_v31 = vrot.slane %v418_v29, 7 }
 0x3ae   : > { %v420_v38 = vpop.f32.mrf.mxu1 }
 0x3af   : > { %v428_v34 = vsel %vm427_vm8, %v423_v30, %v424_v31  ;;  %v429_v35 = vsel %vm427_vm8, %v424_v31, %v423_v30 }
 0x3b0   : > { %v443_v36 = vmul.f32 %v440_v32, %v428_v34  ;;  %v442_v37 = vmul.f32 %v435_v33, %v429_v35 }
 0x3b2   : > { %v445_v39 = vadd.f32 %v443_v36, %v420_v38  ;;  %v444_v40 = vadd.f32 %v442_v37, %v416_v28 }
 0x3b4   : > { %447 = vst [vmem:[%s217_s10 + $0x8] sm:$0xff] %v445_v39  ;;  %446 = vst [vmem:[%s217_s10] sm:$0xff] %v444_v40 }
 0x3b5   : > { %626 = shalt.err (!%p623_p3)
}
 0x3b6   : > { %s627_s26 = scalar_lea.hbm %s801_s15, 256  ;;  %s631_s7 = scalar_lea.hbm %s848_s5, 512 }
 0x3b7   : > { %p628_p4 = scmp.ne.s32.totalorder %s801_s15, %s627_s26  ;;  %p632_p9 = scmp.lt.s32.totalorder %s801_s15, %s848_s5 }
 0x3b8   : > { %p633_p10 = scmp.lt.s32.totalorder %s631_s7, %s627_s26 }
 0x3b9   : > { %p629_p7 = pnand %p628_p4, %p749_p5 }
 0x3ba   : > { %p634_p11 = por %p633_p10, %p632_p9 }
 0x3bb   : > { %p630_p8 = pneg %p629_p7 }
 0x3bd   : > { %p635_p12 = pnand %p634_p11, %p630_p8 }
 0x3bf   : > { %638 = shalt.err (!%p635_p12)
}
 0x3c0   : > { %s679_s10 = smov 128   ;;  %s680_s12 = smov 8  }
 0x3c1   : > { %550 = dma.vmem_to_hbm [thread:$0]  (%p749_p5), %s796_s11, 256, %s801_s15, %s803_s22, %s679_s10, %s679_s10, %s680_s12  }
 0x3c2 PF: > { %p556_p13 = scmp.ge.s32.totalorder %s673_s21, 2  ;;  %s477_s13 = sand.u32 1, %s661_s18  }
 0x3c3   : > { %s478_s14 = scalar_lea.sflag [#allocation3], %s477_s13 }
 0x3c4   : > { %p553_p0 = pnand %p556_p13, %p753_p6 }
 0x3c6   : > { %p554_p1 = pneg %p553_p0 }
 0x3c8   : > { %656 = dma.done.wait (%p554_p1), %s478_s14, 256  }
 0x3c9   : > { %658 = vsyncadd (%p554_p1), %s478_s14, 4294967040  ;;  %p15_p2 = scmp.ge.s32.totalorder %s736_s24, 4   ;;  %s851_s18 = smov %s665_s19 }
 0x3ca   : > { %s852_s19 = smov %s669_s20  ;;  %s853_s20 = smov %s747_s27 }
 0x3cb   : > { %s854_s21 = smov %s736_s24  ;;  %17 = sbr.rel (!%p15_p2) target bundleno = 3 (0x3), region = 75 }
 0x3d0   :  { %483 = vsyncpa [#allocation3], 1 }
 0x3d1   :  { %485 = vsyncpa [#allocation3 + $0x1], 1 }

</bundles_post_ra>
